<compile_context>
chip_gen: v6e
topology: v6e:2x2x1
jax: 0.10.0
libtpu: 0.0.40
codegen_flags: <defaults>
</compile_context>

<pallas_src>
import functools

import jax
import jax.numpy as jnp
from jax import lax
from jax.experimental import pallas as pl
from jax.experimental.pallas import tpu as pltpu


def _round_up(x: int, m: int) -> int:
    return ((x + m - 1) // m) * m


def _linear_kernel_fullk(x_ref, w_ref, b_ref, o_ref):
    """Single-shot (tm, tn) output tile; full K resident in VMEM.

    x_ref: (tm, K)  bf16
    w_ref: (tn, K)  bf16   (PyTorch layout; contract dim 1 of both operands)
    b_ref: (1, tn)  f32
    o_ref: (tm, tn) f32
    """
    acc = lax.dot_general(
        x_ref[...],
        w_ref[...],
        dimension_numbers=(((1,), (1,)), ((), ())),
        preferred_element_type=jnp.float32,
    )
    o_ref[...] = acc + b_ref[...]


def _linear_kernel_ksplit(x_ref, w_ref, b_ref, o_ref):
    """K-reduction fallback: accumulate directly into the fp32 output block
    (out index_map ignores k, so the block is resident across the K axis)."""
    k = pl.program_id(2)

    @pl.when(k == 0)
    def _():
        o_ref[...] = jnp.zeros_like(o_ref)

    o_ref[...] += lax.dot_general(
        x_ref[...],
        w_ref[...],
        dimension_numbers=(((1,), (1,)), ((), ())),
        preferred_element_type=jnp.float32,
    )

    @pl.when(k == pl.num_programs(2) - 1)
    def _():
        o_ref[...] += b_ref[...]   # bias added exactly once


@functools.partial(jax.jit, static_argnames=("tm", "tn", "tk"))
def linear_forward(x, weight, bias, *, tm=512, tn=256, tk=None):
    """y = x @ weight.T + bias, matching PyTorch nn.Linear semantics.

    x      : (B, feat)          float32
    weight : (nb_classes, feat) float32  (PyTorch layout, NOT transposed here)
    bias   : (nb_classes,)      float32
    """
    B, K = x.shape
    N = weight.shape[0]

    # --- tile selection (bf16-aware alignment) -------------------------------
    tm = min(tm, _round_up(B, 16))       # bf16 sublane packing -> 16
    Np = _round_up(N, 128)               # lane-dense output width
    tn = min(tn, Np)
    Kp = _round_up(K, 128)

    # --- generation-aware VMEM budget ----------------------------------------
    try:
        vmem_cap = getattr(pltpu.get_tpu_info(), "vmem_capacity_bytes", 64 << 20)
    except Exception:  # pragma: no cover - conservative fallback
        vmem_cap = 64 << 20
    vmem_budget = int(vmem_cap * 0.65)

    def footprint(tk_):
        # double-buffered bf16 inputs + fp32 bias + double-buffered fp32 output
        return 2 * (tm * tk_ * 2 + tn * tk_ * 2 + tn * 4) + 2 * tm * tn * 4

    if tk is None:
        tk = Kp if footprint(Kp) <= vmem_budget // 2 else 2048
    tk = min(tk, Kp)
    while footprint(tk) > vmem_budget // 2 and tk > 128:
        tk = max(128, (tk // 2 // 128) * 128)
    full_k = tk >= Kp

    Mp = _round_up(B, tm)
    Kp = _round_up(Kp, tk)
    Np = _round_up(Np, tn)

    # --- operand prep (cast + zero-pad; pads contribute 0 to the dot) --------
    x_p = x.astype(jnp.bfloat16)
    if (Mp, Kp) != (B, K):
        x_p = jnp.pad(x_p, ((0, Mp - B), (0, Kp - K)))
    w_p = weight.astype(jnp.bfloat16)               # keep (N, K) layout
    if (Np, Kp) != (N, K):
        w_p = jnp.pad(w_p, ((0, Np - N), (0, Kp - K)))
    b_p = bias.astype(jnp.float32).reshape(1, N)
    if Np != N:
        b_p = jnp.pad(b_p, ((0, 0), (0, Np - N)))

    cost = pl.CostEstimate(
        flops=2 * Mp * Np * Kp,
        transcendentals=0,
        bytes_accessed=2 * (Mp * Kp + Np * Kp) + 4 * (Np + Mp * Np),
    )
    vmem_limit = int(min(max(2 * footprint(tk), 32 << 20), max(vmem_budget, 32 << 20)))

    if full_k:
        grid = (Mp // tm, Np // tn)
        kernel = _linear_kernel_fullk
        in_specs = [
            pl.BlockSpec((tm, Kp), lambda i, j: (i, 0)),   # x tile (bf16)
            pl.BlockSpec((tn, Kp), lambda i, j: (j, 0)),   # weight tile (bf16, (N,K))
            pl.BlockSpec((1, tn), lambda i, j: (0, j)),    # bias tile (f32)
        ]
        out_specs = pl.BlockSpec((tm, tn), lambda i, j: (i, j))
        dim_sem = ("parallel", "parallel")
    else:
        grid = (Mp // tm, Np // tn, Kp // tk)
        kernel = _linear_kernel_ksplit
        in_specs = [
            pl.BlockSpec((tm, tk), lambda i, j, k: (i, k)),
            pl.BlockSpec((tn, tk), lambda i, j, k: (j, k)),
            pl.BlockSpec((1, tn), lambda i, j, k: (0, j)),
        ]
        out_specs = pl.BlockSpec((tm, tn), lambda i, j, k: (i, j))
        dim_sem = ("parallel", "parallel", "arbitrary")

    y_full = pl.pallas_call(
        kernel,
        out_shape=jax.ShapeDtypeStruct((Mp, Np), jnp.float32),
        grid_spec=pltpu.PrefetchScalarGridSpec(
            num_scalar_prefetch=0,
            grid=grid,
            in_specs=in_specs,
            out_specs=out_specs,
        ),
        compiler_params=pltpu.CompilerParams(
            dimension_semantics=dim_sem,
            vmem_limit_bytes=vmem_limit,
            allow_input_fusion=[True, True, True],
        ),
        cost_estimate=cost,
    )(x_p, w_p, b_p)

    # Slice padded rows / lanes back off outside the kernel.
    return y_full[:B, :N]


if __name__ == "__main__":
    nb_classes = 10
    feat = 512
    batch = 8

    key = jax.random.PRNGKey(0)
    kx, kw, kb = jax.random.split(key, 3)

    # Deterministic synthetic parameters matching nn.Linear's init range.
    bound = 1.0 / (feat ** 0.5)
    weight = jax.random.uniform(kw, (nb_classes, feat), jnp.float32, -bound, bound)
    bias = jax.random.uniform(kb, (nb_classes,), jnp.float32, -bound, bound)
    x = jax.random.normal(kx, (batch, feat), jnp.float32)

    y = linear_forward(x, weight, bias)
    jax.block_until_ready(y)

    # Reference check (fp32 math; kernel uses bf16 inputs + fp32 accumulation,
    # so tolerances are loosened accordingly).
    y_ref = x @ weight.T + bias
    assert y.shape == (batch, nb_classes)
    assert jnp.allclose(y, y_ref, atol=5e-2, rtol=5e-2), (
        float(jnp.max(jnp.abs(y - y_ref)))
    )

    print("KERNEL_OK")
</pallas_src>

<mosaic_0001>
module attributes {stable_mosaic.version = 11 : i64} {
  func.func @_linear_kernel_fullk(%arg0: i32, %arg1: i32, %arg2: memref<16x512xbf16, #tpu.memory_space<vmem>>, %arg3: memref<128x512xbf16, #tpu.memory_space<vmem>>, %arg4: memref<1x128xf32, #tpu.memory_space<vmem>>, %arg5: memref<16x128xf32, #tpu.memory_space<vmem>>) attributes {dimension_semantics = [#tpu.dimension_semantics<parallel>, #tpu.dimension_semantics<parallel>], iteration_bounds = array<i64: 1, 1>, scalar_prefetch = 0 : i64, scratch_operands = 0 : i64, tpu.core_type = #tpu.core_type<tc>, window_params = [{transform_indices = @transform_0, window_bounds = array<i64: 16, 512>}, {transform_indices = @transform_1, window_bounds = array<i64: 128, 512>}, {transform_indices = @transform_2, window_bounds = array<i64: 1, 128>}, {transform_indices = @transform_3, window_bounds = array<i64: 16, 128>}]} {
    %c0 = arith.constant 0 : index
    %c0_0 = arith.constant 0 : index
    %0 = vector.load %arg2[%c0, %c0_0] : memref<16x512xbf16, #tpu.memory_space<vmem>>, vector<16x512xbf16>
    %c0_1 = arith.constant 0 : index
    %c0_2 = arith.constant 0 : index
    %1 = vector.load %arg3[%c0_1, %c0_2] : memref<128x512xbf16, #tpu.memory_space<vmem>>, vector<128x512xbf16>
    %cst = arith.constant dense<0.000000e+00> : vector<16x128xf32>
    %2 = tpu.matmul %0, %1, %cst {dimension_numbers = #tpu.dot_dimension_numbers<[1], [1], [0], [0], [0, 0, 1, 0], [], []>} : vector<16x512xbf16>, vector<128x512xbf16>, vector<16x128xf32> -> vector<16x128xf32>
    %c0_3 = arith.constant 0 : index
    %c0_4 = arith.constant 0 : index
    %3 = vector.load %arg4[%c0_3, %c0_4] : memref<1x128xf32, #tpu.memory_space<vmem>>, vector<1x128xf32>
    %4 = vector.broadcast %3 : vector<1x128xf32> to vector<16x128xf32>
    %5 = arith.addf %2, %4 : vector<16x128xf32>
    %c0_5 = arith.constant 0 : index
    %c0_6 = arith.constant 0 : index
    %6 = vector.load %arg5[%c0_5, %c0_6] : memref<16x128xf32, #tpu.memory_space<vmem>>, vector<16x128xf32>
    tpu.vector_store %arg5[%c0_5, %c0_6], %5 {strides = array<i32>} : memref<16x128xf32, #tpu.memory_space<vmem>>, vector<16x128xf32>,
    return
  }
  func.func @transform_0(%arg0: i32, %arg1: i32) -> (i32, i32) {
    %c0_i32 = arith.constant 0 : i32
    %c0_i32_0 = arith.constant 0 : i32
    return %arg0, %c0_i32 : i32, i32
  }
  func.func @transform_1(%arg0: i32, %arg1: i32) -> (i32, i32) {
    %c0_i32 = arith.constant 0 : i32
    %c0_i32_0 = arith.constant 0 : i32
    return %arg1, %c0_i32 : i32, i32
  }
  func.func @transform_2(%arg0: i32, %arg1: i32) -> (i32, i32) {
    %c0_i32 = arith.constant 0 : i32
    %c0_i32_0 = arith.constant 0 : i32
    return %c0_i32, %arg1 : i32, i32
  }
  func.func @transform_3(%arg0: i32, %arg1: i32) -> (i32, i32) {
    %c0_i32 = arith.constant 0 : i32
    return %arg0, %arg1 : i32, i32
  }
}

</mosaic_0001>

<bundles_post_ra>
// kernel: linear_forward.2
= control target key start
LH: loop header
LB: loop body
LE: loop exit
PB: predicated region body
PF: predicated region fallthrough
CT: control target
= control target key end

     0   :  { %s1228_s0 = inlined_call_operand.vmem [shape: bf16[10,512], index: 0, kind: input, shape index: {}]   ;;  %s1229_s1 = inlined_call_operand.<no memory space> [shape: bf16[], index: 1, kind: input, shape index: {}]   ;;  %s1230_s2 = inlined_call_operand.vmem [shape: bf16[8,512], index: 2, kind: input, shape index: {}]   ;;  %s1231_s3 = inlined_call_operand.vmem [shape: f32[1,10], index: 3, kind: input, shape index: {}]   ;;  %s1232_s4 = inlined_call_operand.<no memory space> [shape: f32[], index: 4, kind: input, shape index: {}]   ;;  %s1233_s5 = inlined_call_operand.vmem [shape: f32[16,128], index: 5, kind: output, shape index: {}]  }
   0x1   :  { %v10_v0 = vstv %s1229_s1  ;;  %v20_v1 = vstv %s1232_s4 }
   0x2   :  { %v11_v2 = vunpack.i.l.bf16 %v10_v0 }
   0x3   :  { %v126_v4 = vld [vmem:[%s1228_s0] sm:$0xff]   ;;  %v911_v5 = vld [vmem:[%s1228_s0 + $0x10] sm:$0xff]   ;;  %v220_v6 = vlaneseq  ;;  %v1170_v7 = vld [vmem:[%s1228_s0 + $0x8] sm:$0xff]   ;;  %v1122_v26 = vmov 0.0  }
   0x4   :  { %v1159_v3 = vpack.c.bf16 %v11_v2, %v11_v2  ;;  %137 = vst [vmem:[#allocation18] sm:$0xff] %v126_v4   ;;  %v913_v8 = vld [vmem:[%s1228_s0 + $0x18] sm:$0xff]   ;;  %v218_v9 = vunpack.c.l.bf16 %v911_v5  ;;  %v36_v11 = vld [vmem:[%s1230_s2] sm:$0xff]   ;;  %v241_v12 = vunpack.c.h.bf16 %v911_v5  ;;  %v1181_v15 = vld [vmem:[%s1230_s2 + $0x8] sm:$0xff]  }
   0x5   :  { %v221_v10 = vshrl.u32 %v220_v6, 7  ;;  %v264_v13 = vunpack.c.l.bf16 %v913_v8  ;;  %v287_v14 = vunpack.c.h.bf16 %v913_v8  ;;  %42 = vst [vmem:[#allocation17] sm:$0xff] %v36_v11   ;;  %v579_v16 = vld [vmem:[%s1231_s3] sm:$0x1]  ;;  %v586_v17 = vand.u32 127, %v220_v6 }
   0x6   :  { %817 = vmatprep.subr.bf16.mxu0 %v1159_v3  ;;  %858 = vmatprep.subr.bf16.mxu1 %v1159_v3  ;;  %v919_v19 = vcombine.high %v1181_v15, %v1159_v3  ;;  %v918_v39 = vcombine.low %v1181_v15, %v1159_v3 }
   0x7   :  { %v222_v18 = vadd.s32 8, %v221_v10  ;;  %vm583_vm0 = vcmp.lt.s32.totalorder %v221_v10, 1  ;;  %818 = vmatpush1.bf16.xpose.msra.mxu0 %v1159_v3  ;;  %859 = vmatpush1.bf16.xpose.msra.mxu1 %v1159_v3  ;;  %vm588_vm1 = vcmp.lt.s32.totalorder %v586_v17, 10 }
   0x8   :  { %v584_v20 = vsel %vm583_vm0, %v579_v16, %v20_v1  ;;  %819 = vmatprep.subr.bf16.mxu0 %v1159_v3  ;;  %860 = vmatprep.subr.bf16.mxu1 %v1159_v3 }
   0x9   :  { %vm223_vm2 = vcmp.lt.s32.totalorder %v222_v18, 10  ;;  %v589_v21 = vsel %vm588_vm1, %v584_v20, %v20_v1  ;;  %890 = vmatprep.mubr.bf16.mxu1 %v919_v19 }
   0xa   :  { %v224_v22 = vsel %vm223_vm2, %v218_v9, %v11_v2  ;;  %v247_v23 = vsel %vm223_vm2, %v241_v12, %v11_v2  ;;  %v270_v24 = vsel %vm223_vm2, %v264_v13, %v11_v2  ;;  %v293_v25 = vsel %vm223_vm2, %v287_v14, %v11_v2  ;;  %592 = vst [vmem:[#allocation19] sm:$0x1] %v589_v21 }
   0xb   :  { %v226_v27 = vpack.c.bf16 %v1122_v26, %v224_v22  ;;  %v249_v28 = vpack.c.bf16 %v1122_v26, %v247_v23  ;;  %v272_v29 = vpack.c.bf16 %v1122_v26, %v270_v24  ;;  %v295_v30 = vpack.c.bf16 %v1122_v26, %v293_v25 }
   0xc   :  { %v594_v31 = vld [vmem:[#allocation17] sm:$0xff] }
   0xd   :  { %229 = vst [vmem:[#allocation18 + $0x10] sm:$0xf] %v226_v27  ;;  %252 = vst [vmem:[#allocation18 + $0x14] sm:$0xf] %v249_v28  ;;  %v917_v32 = vcombine.high %v594_v31, %v1159_v3  ;;  %v916_v38 = vcombine.low %v594_v31, %v1159_v3 }
   0xe   :  { %275 = vst [vmem:[#allocation18 + $0x18] sm:$0xf] %v272_v29  ;;  %298 = vst [vmem:[#allocation18 + $0x1c] sm:$0xf] %v295_v30 }
   0xf   :  { %820 = vmatpush1.bf16.xpose.msra.mxu0 %v1159_v3  ;;  %861 = vmatpush1.bf16.xpose.msra.mxu1 %v1159_v3 }
  0x10   :  { %821 = vmatprep.subr.bf16.mxu0 %v1159_v3  ;;  %862 = vmatprep.subr.bf16.mxu1 %v1159_v3 }
  0x11   :  { %849 = vmatprep.mubr.bf16.mxu0 %v917_v32  ;;  %v915_v40 = vld [vmem:[#allocation19] ss:$0 sm:$0xff] }
  0x14   :  { %v1115_v34 = vld [vmem:[#allocation18 + $0x4] ss:$16 sps:$4 sm:$0xff]   ;;  %v1118_v36 = vld [vmem:[#allocation18] ss:$16 sps:$4 sm:$0xff]  }
  0x15   :  { %v601_v33 = vld [vmem:[#allocation18 + $0x18] sm:$0xff] }
  0x16   :  { %v923_v35 = vcombine.high %v1170_v7, %v601_v33  ;;  %v922_v37 = vcombine.low %v1170_v7, %v601_v33 }
  0x17   :  { %822 = vmatpush1.bf16.xpose.msra.mxu0 %v1159_v3  ;;  %863 = vmatpush1.bf16.xpose.msra.mxu1 %v1159_v3 }
  0x18   :  { %823 = vmatprep.subr.bf16.mxu0 %v1159_v3  ;;  %864 = vmatprep.subr.bf16.mxu1 %v1159_v3 }
  0x1f   :  { %824 = vmatpush1.bf16.xpose.msra.mxu0 %v1159_v3  ;;  %865 = vmatpush1.bf16.xpose.msra.mxu1 %v1159_v3 }
  0x20   :  { %825 = vmatprep.subr.bf16.mxu0 %v1159_v3  ;;  %866 = vmatprep.subr.bf16.mxu1 %v1159_v3 }
  0x27   :  { %826 = vmatpush1.bf16.xpose.msra.mxu0 %v1159_v3  ;;  %867 = vmatpush1.bf16.xpose.msra.mxu1 %v1159_v3 }
  0x28   :  { %827 = vmatprep.subr.bf16.mxu0 %v1159_v3  ;;  %868 = vmatprep.subr.bf16.mxu1 %v1159_v3 }
  0x2f   :  { %828 = vmatpush1.bf16.xpose.msra.mxu0 %v1159_v3  ;;  %869 = vmatpush1.bf16.xpose.msra.mxu1 %v1159_v3 }
  0x30   :  { %829 = vmatprep.subr.bf16.mxu0 %v1159_v3  ;;  %870 = vmatprep.subr.bf16.mxu1 %v1159_v3 }
  0x37   :  { %830 = vmatpush1.bf16.xpose.msra.mxu0 %v1159_v3  ;;  %871 = vmatpush1.bf16.xpose.msra.mxu1 %v1159_v3 }
  0x38   :  { %831 = vmatprep.subr.bf16.mxu0 %v1115_v34  ;;  %872 = vmatprep.subr.bf16.mxu1 %v923_v35 }
  0x3f   :  { %832 = vmatpush1.bf16.xpose.msra.mxu0 %v1118_v36  ;;  %873 = vmatpush1.bf16.xpose.msra.mxu1 %v922_v37 }
  0x46   :  { %850 = vmatmul.mubr.bf16.vlgmr.msra.gmra.mxu0 %v916_v38  ;;  %891 = vmatmul.mubr.bf16.vlgmr.msra.gmra.mxu1 %v918_v39 }
 0x106   :  { %v851_v41 = vpop.f32.mrf.mxu0  ;;  %v892_v42 = vpop.f32.mrf.mxu1 }
 0x107   :  { %v852_v43 = vadd.f32 %v915_v40, %v851_v41 }
 0x108   :  { %v853_v44 = vpop.f32.mrf.mxu0  ;;  %v894_v45 = vpop.f32.mrf.mxu1 }
 0x109   :  { %v893_v46 = vadd.f32 %v892_v42, %v852_v43 }
 0x10a   :  { %v854_v47 = vpop.f32.mrf.mxu0  ;;  %v895_v48 = vpop.f32.mrf.mxu1 }
 0x10b   :  { %899 = vst [vmem:[%s1233_s5] sm:$0xff] %v893_v46  ;;  %v855_v49 = vadd.f32 %v915_v40, %v854_v47 }
 0x10c   :  { %v856_v50 = vpop.f32.mrf.mxu0  ;;  %v897_v51 = vpop.f32.mrf.mxu1 }
 0x10d   :  { %v896_v52 = vadd.f32 %v895_v48, %v855_v49 }
 0x10f   :  { %900 = vst [vmem:[%s1233_s5 + $0x8] sm:$0xff] %v896_v52 }

</bundles_post_ra>
